<compile_context>
chip_gen: v5e
topology: v5e:2x2
jax: 0.10.0
libtpu: 0.0.40
codegen_flags: <defaults>
</compile_context>

<pallas_src>
import functools

import jax
import jax.numpy as jnp
from jax.experimental import pallas as pl
from jax.experimental.pallas import tpu as pltpu


def _round_up(n, m):
    return ((n + m - 1) // m) * m


def _auto_tile(batch, *, max_tile_b=512, num_cores=1):
    """Pick (tile_b, num_steps): largest tile <= max_tile_b, grid length a multiple
    of num_cores (set num_cores=2 on v7x so the "parallel" axis feeds both TCs)."""
    bp = _round_up(max(batch, 8), 8)
    per_core = _round_up(-(-bp // num_cores), 8)
    steps_per_core = max(1, -(-per_core // max_tile_b))
    steps = num_cores * steps_per_core
    tile_b = _round_up(-(-bp // steps), 8)
    return tile_b, steps


def _residual_block_kernel(x_ref, emb_ref, cond_ref, wx_ref, we_ref, wc_ref,
                           bias_ref, out_ref, *, out_features):
    f32 = jnp.float32
    fp = out_ref.shape[-1]              # lane-padded feature width (multiple of 128)
    mm_dtype = wx_ref.dtype             # f32 or bf16 MXU operands

    x = x_ref[...].astype(f32)
    emb = emb_ref[...].astype(f32)
    cond = cond_ref[...].astype(f32)

    # emb_layer = Sequential(SiLU, Linear): SiLU on the EUP slot, then accumulate
    # the two matmuls in f32 -- no lane concatenate / VMEM copy per step.
    silu_emb = emb * jax.nn.sigmoid(emb)
    h = jnp.dot(x.astype(mm_dtype), wx_ref[...], preferred_element_type=f32)
    h = h + jnp.dot(silu_emb.astype(mm_dtype), we_ref[...],
                    preferred_element_type=f32)

    b = bias_ref[...]                    # (8, Fp) f32 bias/param slab
    h = h + b[0:1, :]                    # bfc + bemb (pad lanes exactly 0)

    # LayerNorm over the real out_features only.  Pad lanes of h are exactly zero,
    # so the mean is exact; the variance uses the precomputed 1/0 mask (slab row 5)
    # instead of a per-step iota + compare + select.
    mask = b[5:6, :]
    inv_f = 1.0 / out_features
    mean = jnp.sum(h, axis=-1, keepdims=True) * inv_f
    centered = h - mean
    var = jnp.sum(centered * centered * mask, axis=-1, keepdims=True) * inv_f
    hn = centered * jax.lax.rsqrt(var + 1e-5)
    hn = hn * b[1:2, :] + b[2:3, :]      # gamma, beta (pad lanes 0 -> hn pad lanes 0)

    # Single MXU op for scale AND shift: cond @ [Wsc^T | Wsh^T] -> (TB, 2*Fp).
    ss = jnp.dot(cond.astype(mm_dtype), wc_ref[...], preferred_element_type=f32)
    scale = ss[:, :fp] + b[3:4, :]
    shift = ss[:, fp:] + b[4:5, :]
    hn = hn * (1.0 + scale) + shift      # FiLM; pad lanes stay exactly 0

    out = hn * jax.nn.sigmoid(hn)        # act = SiLU; Dropout(p=0) is the identity
    out_ref[...] = out.astype(out_ref.dtype)


def pack_params(params, *, matmul_dtype=jnp.float32):
    """One-time packing: transpose, fuse, and lane-pad the PyTorch-layout params.

    bf16 `matmul_dtype` is fine on v5e/v6e/v7x (MXU takes bf16 at full rate on all
    of them); only the MXU operands are narrowed -- accumulation and the bias slab
    stay f32.  Note the activations are also cast to bf16 at the dot (mixed
    f32 x bf16 MXU operands are not supported), so use f32 on quality-critical paths.
    """
    wfc, bfc = params["wfc"], params["bfc"]
    wemb, bemb = params["wemb"], params["bemb"]
    gamma, beta = params["gamma"], params["beta"]
    wsc, bsc = params["wsc"], params["bsc"]
    wsh, bsh = params["wsh"], params["bsh"]

    out_f, in_f = wfc.shape
    time_f = wemb.shape[1]
    cond_dim = wsc.shape[1]
    fp = _round_up(out_f, 128)

    # fc weight (in_f, Fp) and emb_layer weight (time_f, Fp): zero-padded lanes.
    wx = jnp.zeros((in_f, fp), jnp.float32).at[:, :out_f].set(wfc.T)
    we = jnp.zeros((time_f, fp), jnp.float32).at[:, :out_f].set(wemb.T)

    # Fused scale | shift weight: (cond_dim, 2*Fp).
    wc = jnp.zeros((cond_dim, 2 * fp), jnp.float32)
    wc = wc.at[:, :out_f].set(wsc.T).at[:, fp:fp + out_f].set(wsh.T)

    # One (8, Fp) slab for every per-feature vector (pad rows / lanes are zero).
    bias = jnp.zeros((8, fp), jnp.float32)
    bias = bias.at[0, :out_f].set(bfc + bemb)   # fused linear bias
    bias = bias.at[1, :out_f].set(gamma)
    bias = bias.at[2, :out_f].set(beta)
    bias = bias.at[3, :out_f].set(bsc)
    bias = bias.at[4, :out_f].set(bsh)
    bias = bias.at[5, :out_f].set(1.0)          # LayerNorm valid-lane mask

    return {
        "wx": wx.astype(matmul_dtype),
        "we": we.astype(matmul_dtype),
        "wc": wc.astype(matmul_dtype),
        "bias": bias,
        "out_features": out_f,
    }


def residual_block(x, emb, cond, packed, *, tile_b=None, num_cores=1,
                   max_tile_b=512, trim_output=True):
    """Fused ResidualBlock forward.  `packed` comes from pack_params() (done once).

    tile_b=None auto-picks the largest batch tile (<= max_tile_b rows) and a grid
    length that is a multiple of `num_cores` (pass num_cores=2 on v7x).
    trim_output=False returns the lane-padded (padded_batch, Fp) slab -- its pad
    lanes are exactly zero -- avoiding the post-kernel 2-D slice copy.
    """
    wx, we, wc, bias = packed["wx"], packed["we"], packed["wc"], packed["bias"]
    out_f = packed["out_features"]

    batch = x.shape[0]
    in_f, time_f, cond_dim = x.shape[1], emb.shape[1], cond.shape[1]
    fp = wx.shape[1]

    if tile_b is None:
        tile_b, steps = _auto_tile(batch, max_tile_b=max_tile_b,
                                   num_cores=num_cores)
    else:
        assert tile_b % 8 == 0, "tile_b must be a multiple of 8 (sublane)"
        steps = -(-batch // tile_b)
    total = steps * tile_b

    # Padding is at most steps*8-ish rows (negligible); choose tile_b so production
    # batch sizes divide evenly if even that matters.
    if total != batch:
        pad = ((0, total - batch), (0, 0))
        x, emb, cond = jnp.pad(x, pad), jnp.pad(emb, pad), jnp.pad(cond, pad)

    grid = (steps,)
    in_specs = [
        pl.BlockSpec((tile_b, in_f), lambda i: (i, 0)),
        pl.BlockSpec((tile_b, time_f), lambda i: (i, 0)),
        pl.BlockSpec((tile_b, cond_dim), lambda i: (i, 0)),
        # Weights / bias slab: constant index maps -> fetched once, VMEM-resident.
        pl.BlockSpec((in_f, fp), lambda i: (0, 0)),
        pl.BlockSpec((time_f, fp), lambda i: (0, 0)),
        pl.BlockSpec((cond_dim, 2 * fp), lambda i: (0, 0)),
        pl.BlockSpec((8, fp), lambda i: (0, 0)),
    ]
    out_specs = pl.BlockSpec((tile_b, fp), lambda i: (i, 0))

    itemsize = jnp.dtype(x.dtype).itemsize
    flops = int(total * (2 * (in_f + time_f) * fp + 2 * cond_dim * 2 * fp + 12 * fp))
    transcendentals = int(total * (time_f + fp + 1))
    bytes_accessed = int(x.nbytes + emb.nbytes + cond.nbytes + wx.nbytes
                         + we.nbytes + wc.nbytes + bias.nbytes
                         + total * fp * itemsize)

    out = pl.pallas_call(
        functools.partial(_residual_block_kernel, out_features=out_f),
        out_shape=jax.ShapeDtypeStruct((total, fp), x.dtype),
        grid=grid,
        in_specs=in_specs,
        out_specs=out_specs,
        compiler_params=pltpu.CompilerParams(dimension_semantics=("parallel",)),
        cost_estimate=pl.CostEstimate(flops=flops,
                                      transcendentals=transcendentals,
                                      bytes_accessed=bytes_accessed),
    )(x, emb, cond, wx, we, wc, bias)

    if trim_output:
        return out[:batch, :out_f]
    return out   # (total, Fp) lane-dense slab; pad lanes are exactly zero


def residual_block_ref(x, emb, cond, params):
    """Pure-JAX reference (PyTorch-layout params) for correctness checking."""
    h = x @ params["wfc"].T + params["bfc"]
    e = emb * jax.nn.sigmoid(emb)
    h = h + e @ params["wemb"].T + params["bemb"]
    mean = jnp.mean(h, axis=-1, keepdims=True)
    var = jnp.mean((h - mean) ** 2, axis=-1, keepdims=True)
    hn = (h - mean) / jnp.sqrt(var + 1e-5)
    hn = hn * params["gamma"] + params["beta"]
    scale = cond @ params["wsc"].T + params["bsc"]
    shift = cond @ params["wsh"].T + params["bsh"]
    hn = hn * (1.0 + scale) + shift
    return hn * jax.nn.sigmoid(hn)


if __name__ == "__main__":
    batch = 2
    in_features = 32
    out_features = 32
    time_features = 16
    cond_dim = 8

    key = jax.random.PRNGKey(0)
    ks = jax.random.split(key, 16)

    def make_inputs(b, k0, k1, k2):
        xx = jax.random.normal(k0, (b, in_features), dtype=jnp.float32)
        ee = jax.random.normal(k1, (b, time_features), dtype=jnp.float32)
        cc = jax.random.normal(k2, (b, cond_dim), dtype=jnp.float32)
        return xx, ee, cc

    params = {
        # fc: Linear(in_features, out_features)
        "wfc": 0.1 * jax.random.normal(ks[6], (out_features, in_features), jnp.float32),
        "bfc": 0.1 * jax.random.normal(ks[7], (out_features,), jnp.float32),
        # emb_layer[1]: linear(time_features, out_features)
        "wemb": 0.1 * jax.random.normal(ks[8], (out_features, time_features), jnp.float32),
        "bemb": 0.1 * jax.random.normal(ks[9], (out_features,), jnp.float32),
        # AdaLayerNorm.norm: LayerNorm(out_features)  (PyTorch init: ones / zeros)
        "gamma": jnp.ones((out_features,), jnp.float32),
        "beta": jnp.zeros((out_features,), jnp.float32),
        # AdaLayerNorm.scale / .shift: Linear(cond_dim, out_features)
        "wsc": 0.1 * jax.random.normal(ks[10], (out_features, cond_dim), jnp.float32),
        "bsc": 0.1 * jax.random.normal(ks[11], (out_features,), jnp.float32),
        "wsh": 0.1 * jax.random.normal(ks[12], (out_features, cond_dim), jnp.float32),
        "bsh": 0.1 * jax.random.normal(ks[13], (out_features,), jnp.float32),
    }

    # --- small batch, f32 MXU operands: exact-path check ---
    x, emb, cond = make_inputs(batch, ks[0], ks[1], ks[2])
    ref = residual_block_ref(x, emb, cond, params)

    packed_f32 = pack_params(params, matmul_dtype=jnp.float32)
    out = jax.block_until_ready(residual_block(x, emb, cond, packed_f32))
    assert out.shape == (batch, out_features)
    assert jnp.allclose(out, ref, atol=1e-4, rtol=1e-4), "f32 mismatch vs reference"

    # --- bf16 MXU operands (fine on v5e/v6e/v7x); f32 accumulation + f32 LN/FiLM/SiLU ---
    packed_bf16 = pack_params(params, matmul_dtype=jnp.bfloat16)
    out_bf16 = jax.block_until_ready(residual_block(x, emb, cond, packed_bf16))
    assert out_bf16.shape == (batch, out_features)
    assert jnp.allclose(out_bf16, ref, atol=1e-1, rtol=1e-1), "bf16 mismatch vs reference"

    # --- ragged larger batch, grid shaped for 2 TensorCores (v7x), untrimmed slab ---
    batch2 = 200
    x2, emb2, cond2 = make_inputs(batch2, ks[3], ks[4], ks[5])
    ref2 = residual_block_ref(x2, emb2, cond2, params)
    out2 = jax.block_until_ready(
        residual_block(x2, emb2, cond2, packed_f32, num_cores=2, trim_output=False))
    assert out2.shape[1] == 128 and out2.shape[0] >= batch2
    assert jnp.allclose(out2[:batch2, :out_features], ref2, atol=1e-4, rtol=1e-4), \
        "multi-step grid mismatch vs reference"
    # Pad lanes of the untrimmed slab are exactly zero (consumers may keep it as-is).
    assert jnp.all(out2[:, out_features:] == 0.0)

    print("KERNEL_OK")
</pallas_src>

<mosaic_0001>
module attributes {stable_mosaic.version = 11 : i64} {
  func.func @_residual_block_kernel(%arg0: i32, %arg1: memref<8x32xf32, #tpu.memory_space<vmem>>, %arg2: memref<8x16xf32, #tpu.memory_space<vmem>>, %arg3: memref<8x8xf32, #tpu.memory_space<vmem>>, %arg4: memref<32x128xf32, #tpu.memory_space<vmem>>, %arg5: memref<16x128xf32, #tpu.memory_space<vmem>>, %arg6: memref<8x256xf32, #tpu.memory_space<vmem>>, %arg7: memref<8x128xf32, #tpu.memory_space<vmem>>, %arg8: memref<8x128xf32, #tpu.memory_space<vmem>>) attributes {dimension_semantics = [#tpu.dimension_semantics<parallel>], iteration_bounds = array<i64: 1>, scalar_prefetch = 0 : i64, scratch_operands = 0 : i64, tpu.core_type = #tpu.core_type<tc>, window_params = [{transform_indices = @transform_0, window_bounds = array<i64: 8, 32>}, {transform_indices = @transform_1, window_bounds = array<i64: 8, 16>}, {transform_indices = @transform_2, window_bounds = array<i64: 8, 8>}, {pipeline_mode = #tpu.pipeline_mode<synchronous>, transform_indices = @transform_3, window_bounds = array<i64: 32, 128>}, {pipeline_mode = #tpu.pipeline_mode<synchronous>, transform_indices = @transform_4, window_bounds = array<i64: 16, 128>}, {pipeline_mode = #tpu.pipeline_mode<synchronous>, transform_indices = @transform_5, window_bounds = array<i64: 8, 256>}, {pipeline_mode = #tpu.pipeline_mode<synchronous>, transform_indices = @transform_6, window_bounds = array<i64: 8, 128>}, {transform_indices = @transform_7, window_bounds = array<i64: 8, 128>}]} {
    %c0 = arith.constant 0 : index
    %c0_0 = arith.constant 0 : index
    %0 = vector.load %arg1[%c0, %c0_0] : memref<8x32xf32, #tpu.memory_space<vmem>>, vector<8x32xf32>
    %c0_1 = arith.constant 0 : index
    %c0_2 = arith.constant 0 : index
    %1 = vector.load %arg2[%c0_1, %c0_2] : memref<8x16xf32, #tpu.memory_space<vmem>>, vector<8x16xf32>
    %c0_3 = arith.constant 0 : index
    %c0_4 = arith.constant 0 : index
    %2 = vector.load %arg3[%c0_3, %c0_4] : memref<8x8xf32, #tpu.memory_space<vmem>>, vector<8x8xf32>
    %3 = arith.negf %1 : vector<8x16xf32>
    %4 = math.exp %3 : vector<8x16xf32>
    %cst = arith.constant 1.000000e+00 : f32
    %5 = vector.broadcast %cst : f32 to vector<8x16xf32>
    %6 = arith.addf %5, %4 : vector<8x16xf32>
    %7 = arith.divf %5, %6 : vector<8x16xf32>
    %8 = arith.mulf %1, %7 : vector<8x16xf32>
    %c0_5 = arith.constant 0 : index
    %c0_6 = arith.constant 0 : index
    %9 = vector.load %arg4[%c0_5, %c0_6] : memref<32x128xf32, #tpu.memory_space<vmem>>, vector<32x128xf32>
    %cst_7 = arith.constant dense<0.000000e+00> : vector<8x128xf32>
    %10 = tpu.matmul %0, %9, %cst_7 {dimension_numbers = #tpu.dot_dimension_numbers<[1], [0], [0], [1], [0, 0, 1, 1], [], []>} : vector<8x32xf32>, vector<32x128xf32>, vector<8x128xf32> -> vector<8x128xf32>
    %c0_8 = arith.constant 0 : index
    %c0_9 = arith.constant 0 : index
    %11 = vector.load %arg5[%c0_8, %c0_9] : memref<16x128xf32, #tpu.memory_space<vmem>>, vector<16x128xf32>
    %cst_10 = arith.constant dense<0.000000e+00> : vector<8x128xf32>
    %12 = tpu.matmul %8, %11, %cst_10 {dimension_numbers = #tpu.dot_dimension_numbers<[1], [0], [0], [1], [0, 0, 1, 1], [], []>} : vector<8x16xf32>, vector<16x128xf32>, vector<8x128xf32> -> vector<8x128xf32>
    %13 = arith.addf %10, %12 : vector<8x128xf32>
    %c0_11 = arith.constant 0 : index
    %c0_12 = arith.constant 0 : index
    %14 = vector.load %arg7[%c0_11, %c0_12] : memref<8x128xf32, #tpu.memory_space<vmem>>, vector<8x128xf32>
    %15 = vector.extract_strided_slice %14 {offsets = [0, 0], sizes = [1, 128], strides = [1, 1]} : vector<8x128xf32> to vector<1x128xf32>
    %16 = vector.broadcast %15 : vector<1x128xf32> to vector<8x128xf32>
    %17 = arith.addf %13, %16 : vector<8x128xf32>
    %18 = vector.extract_strided_slice %14 {offsets = [5, 0], sizes = [1, 128], strides = [1, 1]} : vector<8x128xf32> to vector<1x128xf32>
    %cst_13 = arith.constant dense<0.000000e+00> : vector<8xf32>
    %19 = vector.multi_reduction <add>, %17, %cst_13 [1] : vector<8x128xf32> to vector<8xf32>
    %20 = vector.shape_cast %19 : vector<8xf32> to vector<8x1xf32>
    %cst_14 = arith.constant 3.125000e-02 : f32
    %21 = vector.broadcast %cst_14 : f32 to vector<8x1xf32>
    %22 = arith.mulf %20, %21 : vector<8x1xf32>
    %23 = vector.broadcast %22 : vector<8x1xf32> to vector<8x128xf32>
    %24 = arith.subf %17, %23 : vector<8x128xf32>
    %25 = arith.mulf %24, %24 : vector<8x128xf32>
    %26 = vector.broadcast %18 : vector<1x128xf32> to vector<8x128xf32>
    %27 = arith.mulf %25, %26 : vector<8x128xf32>
    %cst_15 = arith.constant dense<0.000000e+00> : vector<8xf32>
    %28 = vector.multi_reduction <add>, %27, %cst_15 [1] : vector<8x128xf32> to vector<8xf32>
    %29 = vector.shape_cast %28 : vector<8xf32> to vector<8x1xf32>
    %cst_16 = arith.constant 3.125000e-02 : f32
    %30 = vector.broadcast %cst_16 : f32 to vector<8x1xf32>
    %31 = arith.mulf %29, %30 : vector<8x1xf32>
    %cst_17 = arith.constant 9.99999974E-6 : f32
    %32 = vector.broadcast %cst_17 : f32 to vector<8x1xf32>
    %33 = arith.addf %31, %32 : vector<8x1xf32>
    %34 = math.rsqrt %33 : vector<8x1xf32>
    %35 = vector.broadcast %34 : vector<8x1xf32> to vector<8x128xf32>
    %36 = arith.mulf %24, %35 : vector<8x128xf32>
    %37 = vector.extract_strided_slice %14 {offsets = [1, 0], sizes = [1, 128], strides = [1, 1]} : vector<8x128xf32> to vector<1x128xf32>
    %38 = vector.broadcast %37 : vector<1x128xf32> to vector<8x128xf32>
    %39 = arith.mulf %36, %38 : vector<8x128xf32>
    %40 = vector.extract_strided_slice %14 {offsets = [2, 0], sizes = [1, 128], strides = [1, 1]} : vector<8x128xf32> to vector<1x128xf32>
    %41 = vector.broadcast %40 : vector<1x128xf32> to vector<8x128xf32>
    %42 = arith.addf %39, %41 : vector<8x128xf32>
    %c0_18 = arith.constant 0 : index
    %c0_19 = arith.constant 0 : index
    %43 = vector.load %arg6[%c0_18, %c0_19] : memref<8x256xf32, #tpu.memory_space<vmem>>, vector<8x256xf32>
    %cst_20 = arith.constant dense<0.000000e+00> : vector<8x256xf32>
    %44 = tpu.matmul %2, %43, %cst_20 {dimension_numbers = #tpu.dot_dimension_numbers<[1], [0], [0], [1], [0, 0, 1, 1], [], []>} : vector<8x8xf32>, vector<8x256xf32>, vector<8x256xf32> -> vector<8x256xf32>
    %45 = vector.extract_strided_slice %44 {offsets = [0, 0], sizes = [8, 128], strides = [1, 1]} : vector<8x256xf32> to vector<8x128xf32>
    %46 = vector.extract_strided_slice %14 {offsets = [3, 0], sizes = [1, 128], strides = [1, 1]} : vector<8x128xf32> to vector<1x128xf32>
    %47 = vector.broadcast %46 : vector<1x128xf32> to vector<8x128xf32>
    %48 = arith.addf %45, %47 : vector<8x128xf32>
    %49 = vector.extract_strided_slice %44 {offsets = [0, 128], sizes = [8, 128], strides = [1, 1]} : vector<8x256xf32> to vector<8x128xf32>
    %50 = vector.extract_strided_slice %14 {offsets = [4, 0], sizes = [1, 128], strides = [1, 1]} : vector<8x128xf32> to vector<1x128xf32>
    %51 = vector.broadcast %50 : vector<1x128xf32> to vector<8x128xf32>
    %52 = arith.addf %49, %51 : vector<8x128xf32>
    %cst_21 = arith.constant 1.000000e+00 : f32
    %53 = vector.broadcast %cst_21 : f32 to vector<8x128xf32>
    %54 = arith.addf %53, %48 : vector<8x128xf32>
    %55 = arith.mulf %42, %54 : vector<8x128xf32>
    %56 = arith.addf %55, %52 : vector<8x128xf32>
    %57 = arith.negf %56 : vector<8x128xf32>
    %58 = math.exp %57 : vector<8x128xf32>
    %cst_22 = arith.constant 1.000000e+00 : f32
    %59 = vector.broadcast %cst_22 : f32 to vector<8x128xf32>
    %60 = arith.addf %59, %58 : vector<8x128xf32>
    %61 = arith.divf %59, %60 : vector<8x128xf32>
    %62 = arith.mulf %56, %61 : vector<8x128xf32>
    %c0_23 = arith.constant 0 : index
    %c0_24 = arith.constant 0 : index
    %63 = vector.load %arg8[%c0_23, %c0_24] : memref<8x128xf32, #tpu.memory_space<vmem>>, vector<8x128xf32>
    tpu.vector_store %arg8[%c0_23, %c0_24], %62 {strides = array<i32>} : memref<8x128xf32, #tpu.memory_space<vmem>>, vector<8x128xf32>,
    return
  }
  func.func @transform_0(%arg0: i32) -> (i32, i32) {
    %c0_i32 = arith.constant 0 : i32
    %c0_i32_0 = arith.constant 0 : i32
    return %arg0, %c0_i32 : i32, i32
  }
  func.func @transform_1(%arg0: i32) -> (i32, i32) {
    %c0_i32 = arith.constant 0 : i32
    %c0_i32_0 = arith.constant 0 : i32
    return %arg0, %c0_i32 : i32, i32
  }
  func.func @transform_2(%arg0: i32) -> (i32, i32) {
    %c0_i32 = arith.constant 0 : i32
    %c0_i32_0 = arith.constant 0 : i32
    return %arg0, %c0_i32 : i32, i32
  }
  func.func @transform_3(%arg0: i32) -> (i32, i32) {
    %c0_i32 = arith.constant 0 : i32
    %c0_i32_0 = arith.constant 0 : i32
    %c0_i32_1 = arith.constant 0 : i32
    return %c0_i32, %c0_i32_0 : i32, i32
  }
  func.func @transform_4(%arg0: i32) -> (i32, i32) {
    %c0_i32 = arith.constant 0 : i32
    %c0_i32_0 = arith.constant 0 : i32
    %c0_i32_1 = arith.constant 0 : i32
    return %c0_i32, %c0_i32_0 : i32, i32
  }
  func.func @transform_5(%arg0: i32) -> (i32, i32) {
    %c0_i32 = arith.constant 0 : i32
    %c0_i32_0 = arith.constant 0 : i32
    %c0_i32_1 = arith.constant 0 : i32
    return %c0_i32, %c0_i32_0 : i32, i32
  }
  func.func @transform_6(%arg0: i32) -> (i32, i32) {
    %c0_i32 = arith.constant 0 : i32
    %c0_i32_0 = arith.constant 0 : i32
    %c0_i32_1 = arith.constant 0 : i32
    return %c0_i32, %c0_i32_0 : i32, i32
  }
  func.func @transform_7(%arg0: i32) -> (i32, i32) {
    %c0_i32 = arith.constant 0 : i32
    %c0_i32_0 = arith.constant 0 : i32
    return %arg0, %c0_i32 : i32, i32
  }
}

</mosaic_0001>

<bundles_post_ra>
// kernel: tpu_custom_call.1
= control target key start
LH: loop header
LB: loop body
LE: loop exit
PB: predicated region body
PF: predicated region fallthrough
CT: control target
= control target key end

     0   :  { %12 = vsyncpa [#allocation3], 0  ;;  %s634_s0 = inlined_call_operand.hbm [shape: f32[8,32], index: 0, kind: input, shape index: {}]   ;;  %s635_s1 = inlined_call_operand.hbm [shape: f32[8,16], index: 1, kind: input, shape index: {}]   ;;  %s636_s2 = inlined_call_operand.hbm [shape: f32[8,8], index: 2, kind: input, shape index: {}]   ;;  %s637_s3 = inlined_call_operand.hbm [shape: f32[32,128], index: 3, kind: input, shape index: {}]   ;;  %s638_s4 = inlined_call_operand.hbm [shape: f32[16,128], index: 4, kind: input, shape index: {}]   ;;  %s639_s5 = inlined_call_operand.hbm [shape: f32[8,256], index: 5, kind: input, shape index: {}]   ;;  %s640_s6 = inlined_call_operand.hbm [shape: f32[8,128], index: 6, kind: input, shape index: {}]   ;;  %s641_s7 = inlined_call_operand.hbm [shape: f32[8,128], index: 7, kind: output, shape index: {}]  }
   0x1   :  { %13 = vsyncpa [#allocation6], 0 }
   0x2   :  { %14 = vsyncpa [#allocation9], 0 }
   0x3   :  { %15 = vsyncpa [#allocation12], 0  ;;  %s33_s26 = sshll.u32 %s635_s1, 4  ;;  %s34_s26 = int_to_ptr.hbm [resolvable:$true] %s33_s26 }
   0x4   :  { %16 = vsyncpa [#allocation4], 0  ;;  %s554_s27 = smov [#allocation5]   ;;  %s54_s8 = sshll.u32 %s637_s3, 4  ;;  %s55_s8 = int_to_ptr.hbm [resolvable:$true] %s54_s8 }
   0x5   :  { %s35_s28 = sshll.u32 %s554_s27, 4  ;;  %s555_s9 = smov [#allocation8]   ;;  %s36_s28 = int_to_ptr.vmem [resolvable:$true] %s35_s28 }
   0x6   :  { %38 = dma.hbm_to_vmem [thread:$0]  %s34_s26, 128, %s36_s28, [#allocation6]  }
   0x7   :  { %s56_s10 = sshll.u32 %s555_s9, 4  ;;  %s556_s11 = smov 128   ;;  %s57_s10 = int_to_ptr.vmem [resolvable:$true] %s56_s10 }
   0x8   :  { %s557_s12 = smov 8   ;;  %s81_s14 = sshll.u32 %s639_s5, 4  ;;  %s82_s14 = int_to_ptr.hbm [resolvable:$true] %s81_s14 }
   0x9   :  { %62 = dma.hbm_to_vmem [thread:$0]  %s55_s8, 512, %s57_s10, [#allocation9], %s556_s11, %s556_s11, %s557_s12  }
   0xa   :  { %s558_s15 = smov [#allocation11]   ;;  %s22_s18 = sshll.u32 %s634_s0, 4  ;;  %s23_s18 = int_to_ptr.hbm [resolvable:$true] %s22_s18 }
   0xb   :  { %s83_s16 = sshll.u32 %s558_s15, 4  ;;  %s559_s19 = smov [#allocation2]   ;;  %s84_s16 = int_to_ptr.vmem [resolvable:$true] %s83_s16 }
   0xc   :  { %86 = dma.hbm_to_vmem [thread:$0]  %s82_s14, 256, %s84_s16, [#allocation12]  }
   0xd   :  { %s24_s20 = sshll.u32 %s559_s19, 4  ;;  %s44_s23 = sshll.u32 %s636_s2, 4  ;;  %s25_s20 = int_to_ptr.vmem [resolvable:$true] %s24_s20  ;;  %s45_s23 = int_to_ptr.hbm [resolvable:$true] %s44_s23 }
   0xe   :  { %27 = dma.hbm_to_vmem [thread:$0]  %s23_s18, 128, %s25_s20, [#allocation3]  }
   0xf   :  { %s67_s25 = sshll.u32 %s638_s4, 4  ;;  %s560_s26 = smov [#allocation7]   ;;  %s68_s25 = int_to_ptr.hbm [resolvable:$true] %s67_s25 }
  0x10   :  { %s46_s27 = sshll.u32 %s560_s26, 4  ;;  %s561_s0 = smov [#allocation10]   ;;  %s47_s27 = int_to_ptr.vmem [resolvable:$true] %s46_s27 }
  0x11   :  { %49 = dma.hbm_to_vmem [thread:$0]  %s45_s23, 128, %s47_s27, [#allocation6]  }
  0x12   :  { %s69_s28 = sshll.u32 %s561_s0, 4  ;;  %s92_s8 = sshll.u32 %s640_s6, 4  ;;  %s70_s28 = int_to_ptr.vmem [resolvable:$true] %s69_s28  ;;  %s93_s8 = int_to_ptr.hbm [resolvable:$true] %s92_s8 }
  0x13   :  { %75 = dma.hbm_to_vmem [thread:$0]  %s68_s25, 256, %s70_s28, [#allocation9], %s556_s11, %s556_s11, %s557_s12  }
  0x14   :  { %s562_s2 = smov [#allocation13]  }
  0x15   :  { %s94_s9 = sshll.u32 %s562_s2, 4  ;;  %s95_s9 = int_to_ptr.vmem [resolvable:$true] %s94_s9 }
  0x16   :  { %97 = dma.hbm_to_vmem [thread:$0]  %s93_s8, 128, %s95_s9, [#allocation12]  }
  0x17   :  { %544 = dma.done.wait [#allocation3], 128  }
  0x18   :  { %545 = vsyncadd [#allocation3], 4294967168 }
  0x19   :  { %546 = dma.done.wait [#allocation6], 256  }
  0x1a   :  { %547 = vsyncadd [#allocation6], 4294967040 }
  0x1b   :  { %548 = dma.done.wait [#allocation9], 768  }
  0x1c   :  { %549 = vsyncadd [#allocation9], 4294966528 }
  0x1d   :  { %550 = dma.done.wait [#allocation12], 384  }
  0x1e   :  { %551 = vsyncadd [#allocation12], 4294966912  ;;  %v152_v0 = vld [vmem:[#allocation8 + $0x18] sm:$0xff]  ;;  %v151_v1 = vld [vmem:[#allocation8 + $0x10] sm:$0xff]  ;;  %vm179_vm0 = vcmask 261120   ;;  %vm155_vm5 = vcmask 130048  }
  0x1f   :  { %v154_v2 = vld [vmem:[#allocation10 + $0x8] sm:$0xff]  ;;  %195 = vmatpush.msra.mxu1 %v152_v0  ;;  %v153_v3 = vld [vmem:[#allocation10] sm:$0xff]  ;;  %v127_v5 = vld [vmem:[#allocation5] sm:$0xff]  ;;  %vm234_vm6 = vcmask 64512   ;;  %s563_s4 = smov [#allocation14]   ;;  %s313_s12 = sshll.u32 %s641_s7, 4  ;;  %s314_s12 = int_to_ptr.hbm [resolvable:$true] %s313_s12 }
  0x20   :  { %173 = vmatpush.msra.mxu0 %v154_v2  ;;  %v150_v4 = vld [vmem:[#allocation8 + $0x8] sm:$0xff]  ;;  %v326_v6 = vmul.f32 -1.442695, %v127_v5  ;;  %v149_v7 = vld [vmem:[#allocation8] sm:$0xff]  ;;  %v232_v28 = vld [vmem:[#allocation11] sm:$0xff]  ;;  %s311_s6 = sshll.u32 %s563_s4, 4  ;;  %s312_s6 = int_to_ptr.vmem [resolvable:$true] %s311_s6 }
  0x21   :  { %196 = vmatpush.msra.mxu1 %v151_v1  ;;  %v126_v8 = vld [vmem:[#allocation2] sm:$0xff]  ;;  %v203_v22 = vld [vmem:[#allocation13] sm:$0xff]  ;;  %v128_v29 = vld [vmem:[#allocation7] sm:$0xff]  ;;  %253 = vmatpush.msra.mxu2 %v232_v28 }
  0x22   :  { %174 = vmatpush.msra.mxu0 %v153_v3  ;;  %342 = vpow2.f32 %v326_v6  ;;  %v204_v24 = vperm.slane %v203_v22, 0  ;;  %v233_v30 = vld [vmem:[#allocation11 + $0x8] sm:$0xff]  ;;  %329 = vmatmul.msk.f32.vlgmr.msra.gmra.mxu2 %vm234_vm6, %v128_v29  ;;  %v211_v34 = vperm.slane %v203_v22, 5  ;;  %v278_v44 = vperm.slane %v203_v22, 3 }
  0x23   :  { %197 = vmatpush.msra.mxu1 %v150_v4  ;;  %273 = vmatpush.msra.mxu3 %v233_v30  ;;  %v228_v48 = vperm.slane %v203_v22, 1  ;;  %v230_v52 = vperm.slane %v203_v22, 2  ;;  %v280_v53 = vperm.slane %v203_v22, 4 }
  0x24   :  { %330 = vmatmul.msk.f32.vlgmr.msra.gmra.mxu3 %vm234_vm6, %v128_v29 }
  0x25   :  { %198 = vmatpush.msra.mxu1 %v149_v7 }
  0x26   :  { %328 = vmatmul.msk.f32.vlgmr.msra.gmra.mxu1 %vm179_vm0, %v126_v8 }
  0x28   :  { %v343_v9 = vpop.eup %342 }
  0x29   :  { %v132_v10 = vadd.f32 1.0, %v343_v9 }
  0x2b   :  { %344 = vrcp.f32 %v132_v10  ;;  %v144_v13 = vand.u32 2147483648, %v132_v10  ;;  %vm138_vm1 = vweird.f32 %v132_v10  ;;  %v142_v15 = vand.u32 2147483647, %v132_v10 }
  0x2d   :  { %v145_v17 = vor.u32 1.1754944e-38, %v144_v13  ;;  %vm143_vm4 = vcmp.eq.f32.partialorder %v142_v15, 8.507059e+37 }
  0x31   :  { %v345_v11 = vpop.eup %344 }
  0x32   :  { %v134_v12 = vmul.f32 %v345_v11, %v132_v10  ;;  %vm139_vm2 = vweird.f32 %v345_v11 }
  0x33   :  { %vm140_vm3 = vmor %vm138_vm1, %vm139_vm2 }
  0x34   :  { %v135_v14 = vsub.f32 1.0, %v134_v12 }
  0x36   :  { %v136_v16 = vmul.f32 %v345_v11, %v135_v14 }
  0x38   :  { %v137_v18 = vadd.f32 %v345_v11, %v136_v16 }
  0x3a   :  { %v141_v19 = vsel %vm140_vm3, %v345_v11, %v137_v18 }
  0x3b   :  { %v146_v20 = vsel %vm143_vm4, %v145_v17, %v141_v19 }
  0x3c   :  { %v148_v21 = vmul.f32 %v146_v20, %v127_v5 }
  0x3e   :  { %327 = vmatmul.msk.f32.vlgmr.msra.gmra.mxu0 %vm155_vm5, %v148_v21 }
  0xa3   :  { %v200_v23 = vpop.f32.mrf.mxu1 }
  0xa5   :  { %v255_v46 = vpop.f32.mrf.mxu2 }
  0xa6   :  { %v279_v49 = vadd.f32 %v278_v44, %v255_v46 }
  0xa7   :  { %v275_v54 = vpop.f32.mrf.mxu3 }
  0xa8   :  { %v282_v56 = vadd.f32 1.0, %v279_v49  ;;  %v281_v58 = vadd.f32 %v280_v53, %v275_v54 }
  0xbb   :  { %v176_v25 = vpop.f32.mrf.mxu0 }
  0xbc   :  { %v201_v26 = vadd.f32 %v200_v23, %v176_v25 }
  0xbe   :  { %v205_v27 = vadd.f32 %v204_v24, %v201_v26 }
  0xc0   :  { %206 = vadd.xlane.f32.xlu0 %v205_v27 }
 0x133   :  { %v207_v31 = vpop.xlane.xlu0 %206 }
 0x134   :  { %v208_v32 = vmul.f32 0.03125, %v207_v31 }
 0x136   :  { %v209_v33 = vsub.f32 %v205_v27, %v208_v32 }
 0x138   :  { %v210_v35 = vmul.f32 %v209_v33, %v209_v33 }
 0x13a   :  { %v212_v36 = vmul.f32 %v211_v34, %v210_v35 }
 0x13c   :  { %213 = vadd.xlane.f32.xlu0 %v212_v36 }
 0x1af   :  { %v214_v37 = vpop.xlane.xlu0 %213 }
 0x1b0   :  { %v215_v38 = vmul.f32 0.03125, %v214_v37 }
 0x1b2   :  { %v216_v39 = vadd.f32 1e-05, %v215_v38 }
 0x1b4   :  { %346 = vrsqrt.f32 %v216_v39  ;;  %vm223_vm8 = vweird.f32 %v216_v39 }
 0x1ba   :  { %v347_v40 = vpop.eup %346 }
 0x1bb   :  { %v218_v41 = vmul.f32 %v347_v40, %v216_v39  ;;  %vm224_vm7 = vweird.f32 %v347_v40 }
 0x1bc   :  { %vm225_vm9 = vmor %vm223_vm8, %vm224_vm7 }
 0x1bd   :  { %v219_v42 = vmul.f32 %v347_v40, %v218_v41 }
 0x1bf   :  { %v220_v43 = vmul.f32 0.5, %v219_v42 }
 0x1c1   :  { %v221_v45 = vsub.f32 1.5, %v220_v43 }
 0x1c3   :  { %v222_v47 = vmul.f32 %v347_v40, %v221_v45 }
 0x1c5   :  { %v226_v50 = vsel %vm225_vm9, %v347_v40, %v222_v47 }
 0x1c6   :  { %v227_v51 = vmul.f32 %v226_v50, %v209_v33 }
 0x1c8   :  { %v229_v55 = vmul.f32 %v228_v48, %v227_v51 }
 0x1ca   :  { %v231_v57 = vadd.f32 %v230_v52, %v229_v55 }
 0x1cc   :  { %v283_v59 = vmul.f32 %v282_v56, %v231_v57 }
 0x1ce   :  { %v284_v60 = vadd.f32 %v283_v59, %v281_v58 }
 0x1d0   :  { %v331_v61 = vmul.f32 -1.442695, %v284_v60 }
 0x1d2   :  { %348 = vpow2.f32 %v331_v61 }
 0x1d8   :  { %v349_v62 = vpop.eup %348 }
 0x1d9   :  { %v288_v63 = vadd.f32 1.0, %v349_v62 }
 0x1db   :  { %350 = vrcp.f32 %v288_v63  ;;  %v300_v3 = vand.u32 2147483648, %v288_v63  ;;  %v298_v5 = vand.u32 2147483647, %v288_v63  ;;  %vm294_vm11 = vweird.f32 %v288_v63 }
 0x1dd   :  { %v301_v7 = vor.u32 1.1754944e-38, %v300_v3  ;;  %vm299_vm13 = vcmp.eq.f32.partialorder %v298_v5, 8.507059e+37 }
 0x1e1   :  { %v351_v0 = vpop.eup %350 }
 0x1e2   :  { %v290_v1 = vmul.f32 %v351_v0, %v288_v63  ;;  %vm295_vm10 = vweird.f32 %v351_v0 }
 0x1e3   :  { %vm296_vm12 = vmor %vm294_vm11, %vm295_vm10 }
 0x1e4   :  { %v291_v2 = vsub.f32 1.0, %v290_v1 }
 0x1e6   :  { %v292_v4 = vmul.f32 %v351_v0, %v291_v2 }
 0x1e8   :  { %v293_v6 = vadd.f32 %v351_v0, %v292_v4 }
 0x1ea   :  { %v297_v8 = vsel %vm296_vm12, %v351_v0, %v293_v6 }
 0x1eb   :  { %v302_v9 = vsel %vm299_vm13, %v301_v7, %v297_v8 }
 0x1ec   :  { %v304_v10 = vmul.f32 %v302_v9, %v284_v60 }
 0x1ee   :  { %305 = vst [vmem:[#allocation14] sm:$0xff] %v304_v10 }
 0x1ef   :  { %316 = dma.vmem_to_hbm [thread:$0]  %s312_s6, 128, %s314_s12, [#allocation4]  }
 0x1f0   :  { %552 = dma.done.wait [#allocation4], 128  }
 0x1f1   :  { %553 = vsyncadd [#allocation4], 4294967168 }
 0x1f2   :  { %321 = vsyncpa [#allocation3], 1 }
 0x1f3   :  { %322 = vsyncpa [#allocation6], 1 }
 0x1f4   :  { %323 = vsyncpa [#allocation9], 1 }
 0x1f5   :  { %324 = vsyncpa [#allocation12], 1 }
 0x1f6   :  { %325 = vsyncpa [#allocation4], 1 }

</bundles_post_ra>
